<compile_context>
chip_gen: v6e
topology: v6e:2x2x1
jax: 0.10.0
libtpu: 0.0.40
codegen_flags: <defaults>
</compile_context>

<pallas_src>
import functools

import jax
import jax.numpy as jnp
from jax.experimental import pallas as pl
from jax.experimental.pallas import tpu as pltpu

# ------------------------- static demo configuration -------------------------
BATCH = 2          # bs
TEMPORAL = 4       # dim=1, the pooled axis
HEIGHT = 16
WIDTH = 16


def _pool_kernel(x_ref, o_ref, *, mode, t_len, feat, inv_t):
    # x_ref: (b_tile, T*F) in VMEM.  Reduce over T by unrolling static lane
    # slices [t*F:(t+1)*F]; F is a multiple of 128 for the demo shape, so each
    # slice is whole vregs and the reduction is pure elementwise VPU work.
    if mode == "max":
        acc = x_ref[:, 0:feat]
        for t in range(1, t_len):
            acc = jnp.maximum(acc, x_ref[:, t * feat:(t + 1) * feat])
        o_ref[...] = acc
    elif mode in ("sum", "mean"):
        # Accumulate in f32 (exact for bf16 inputs; v5e has no bf16 VPU path).
        acc = x_ref[:, 0:feat].astype(jnp.float32)
        for t in range(1, t_len):
            acc = acc + x_ref[:, t * feat:(t + 1) * feat].astype(jnp.float32)
        if mode == "mean":
            # Multiply by static 1/T (exact for power-of-two T; within ~1 ulp
            # of true division otherwise).
            acc = acc * inv_t
        o_ref[...] = acc.astype(o_ref.dtype)
    else:
        raise ValueError(f"unknown mode {mode!r}")


def _choose_b_tile(batch, t_len, feat, itemsize, vmem_budget=16 << 20):
    """Pick a sublane-dense batch tile that fits a conservative VMEM budget
    (double-buffered input + output), so the same tile works on v5e/v6e/v7x."""
    if batch <= 8:
        # One grid step covers the whole batch: no per-step overhead, and the
        # block equals the full array dims so stores are unmasked.
        return batch
    per_row = (2 * t_len * feat + 2 * feat) * itemsize  # in dbl-buf + out dbl-buf
    max_rows = max(8, (vmem_budget // per_row) // 8 * 8)
    b_tile = min(batch, 1024, max_rows)
    return max(8, (b_tile // 8) * 8)


def temporal_pool(x, mode: str = "max"):
    """Pallas equivalent of TemporalPool.forward: pool x over dim=1.

    x: (B, T, *spatial).  Returns (B, *spatial).
    """
    B, T = x.shape[0], x.shape[1]
    trailing = x.shape[2:]
    F = 1
    for d in trailing:
        F *= d
    # Glue reshape: lane-dense layout with the T-reduction on the lane axis.
    x_flat = x.reshape(B, T * F)

    itemsize = jnp.dtype(x.dtype).itemsize
    b_tile = _choose_b_tile(B, T, F, itemsize)
    grid = (pl.cdiv(B, b_tile),)

    # Explicit VMEM limit: per-step footprint + generous headroom, capped so a
    # tile tuned on v5e/v6e still fits v7x's 64 MiB physical / 32 MiB scoped.
    per_step = (2 * b_tile * T * F + 2 * b_tile * F) * itemsize
    vmem_limit = int(min(48 << 20, max(4 << 20, 2 * per_step)))

    kernel = functools.partial(
        _pool_kernel, mode=mode, t_len=T, feat=F, inv_t=1.0 / T)
    out = pl.pallas_call(
        kernel,
        out_shape=jax.ShapeDtypeStruct((B, F), x.dtype),
        grid_spec=pltpu.PrefetchScalarGridSpec(
            num_scalar_prefetch=0,
            grid=grid,
            in_specs=[pl.BlockSpec((b_tile, T * F), lambda b: (b, 0))],
            out_specs=pl.BlockSpec((b_tile, F), lambda b: (b, 0)),
        ),
        compiler_params=pltpu.CompilerParams(
            dimension_semantics=("parallel",),
            vmem_limit_bytes=vmem_limit),
    )(x_flat)
    return out.reshape((B,) + trailing)


# ------------------------- pure-JAX reference -------------------------
def reference(x, mode: str = "max"):
    if mode == "max":
        return jnp.max(x, axis=1)
    if mode == "mean":
        return jnp.mean(x, axis=1)
    if mode == "sum":
        return jnp.sum(x, axis=1)
    raise ValueError(mode)


if __name__ == "__main__":
    key = jax.random.PRNGKey(0)
    x = jax.random.normal(
        key, (BATCH, TEMPORAL, HEIGHT, WIDTH), dtype=jnp.float32)

    for mode in ("max", "mean", "sum"):
        out = jax.block_until_ready(temporal_pool(x, mode=mode))
        assert out.shape == (BATCH, HEIGHT, WIDTH), (mode, out.shape)
        ref = jax.block_until_ready(reference(x, mode=mode))
        assert jnp.allclose(out, ref, rtol=1e-5, atol=1e-5), (
            mode, float(jnp.max(jnp.abs(out - ref))))

    print("KERNEL_OK")
</pallas_src>

<mosaic_0001>
module attributes {stable_mosaic.version = 11 : i64} {
  func.func @_pool_kernel(%arg0: i32, %arg1: memref<2x1024xf32, #tpu.memory_space<vmem>>, %arg2: memref<2x256xf32, #tpu.memory_space<vmem>>) attributes {dimension_semantics = [#tpu.dimension_semantics<parallel>], iteration_bounds = array<i64: 1>, scalar_prefetch = 0 : i64, scratch_operands = 0 : i64, tpu.core_type = #tpu.core_type<tc>, window_params = [{transform_indices = @transform_0, window_bounds = array<i64: 2, 1024>}, {transform_indices = @transform_1, window_bounds = array<i64: 2, 256>}]} {
    %c0 = arith.constant 0 : index
    %c0_0 = arith.constant 0 : index
    %0 = vector.load %arg1[%c0, %c0_0] : memref<2x1024xf32, #tpu.memory_space<vmem>>, vector<2x256xf32>
    %c0_1 = arith.constant 0 : index
    %c256 = arith.constant 256 : index
    %1 = vector.load %arg1[%c0_1, %c256] : memref<2x1024xf32, #tpu.memory_space<vmem>>, vector<2x256xf32>
    %2 = arith.maximumf %0, %1 : vector<2x256xf32>
    %c0_2 = arith.constant 0 : index
    %c512 = arith.constant 512 : index
    %3 = vector.load %arg1[%c0_2, %c512] : memref<2x1024xf32, #tpu.memory_space<vmem>>, vector<2x256xf32>
    %4 = arith.maximumf %2, %3 : vector<2x256xf32>
    %c0_3 = arith.constant 0 : index
    %c768 = arith.constant 768 : index
    %5 = vector.load %arg1[%c0_3, %c768] : memref<2x1024xf32, #tpu.memory_space<vmem>>, vector<2x256xf32>
    %6 = arith.maximumf %4, %5 : vector<2x256xf32>
    %c0_4 = arith.constant 0 : index
    %c0_5 = arith.constant 0 : index
    %7 = vector.load %arg2[%c0_4, %c0_5] : memref<2x256xf32, #tpu.memory_space<vmem>>, vector<2x256xf32>
    tpu.vector_store %arg2[%c0_4, %c0_5], %6 {strides = array<i32>} : memref<2x256xf32, #tpu.memory_space<vmem>>, vector<2x256xf32>,
    return
  }
  func.func @transform_0(%arg0: i32) -> (i32, i32) {
    %c0_i32 = arith.constant 0 : i32
    %c0_i32_0 = arith.constant 0 : i32
    return %arg0, %c0_i32 : i32, i32
  }
  func.func @transform_1(%arg0: i32) -> (i32, i32) {
    %c0_i32 = arith.constant 0 : i32
    %c0_i32_0 = arith.constant 0 : i32
    return %arg0, %c0_i32 : i32, i32
  }
}

</mosaic_0001>

<bundles_post_ra>
// kernel: tpu_custom_call.1
= control target key start
LH: loop header
LB: loop body
LE: loop exit
PB: predicated region body
PF: predicated region fallthrough
CT: control target
= control target key end

     0   :  { %6 = vsyncpa [#allocation3], 0  ;;  %s108_s0 = inlined_call_operand.hbm [shape: f32[2,1024], index: 0, kind: input, shape index: {}]   ;;  %s109_s1 = inlined_call_operand.hbm [shape: f32[2,256], index: 1, kind: output, shape index: {}]  }
   0x1   :  { %7 = vsyncpa [#allocation4], 0  ;;  %s90_s6 = smov [#allocation2]  }
   0x2   :  { %s14_s7 = sshll.u32 %s90_s6, 4  ;;  %s15_s7 = int_to_ptr.vmem [resolvable:$true] %s14_s7 }
   0x3   :  { %s54_s8 = scalar_lea.vmem %s15_s7, 256  ;;  %p59_p1 = scmp.lt.s32.totalorder %s15_s7, %s15_s7 }
   0x4   :  { %p55_p0 = scmp.ne.s32.totalorder %s15_s7, %s54_s8  ;;  %p60_p2 = scmp.lt.s32.totalorder %s54_s8, %s54_s8 }
   0x6   :  { %p61_p3 = por %p60_p2, %p59_p1 }
   0x8   :  { %p62_p4 = pnand %p61_p3, %p55_p0 }
   0xa   :  { %65 = shalt.err (!%p62_p4)
}
   0xb   :  { %17 = dma.hbm_to_vmem [thread:$0]  %s108_s0, 256, %s15_s7, [#allocation3]  }
   0xc   :  { %86 = dma.done.wait [#allocation3], 256  }
   0xd   :  { %87 = vsyncadd [#allocation3], 4294967040  ;;  %v21_v0 = vld [vmem:[#allocation2] sm:$0xf]  ;;  %v22_v1 = vld [vmem:[#allocation2 + $0x4] sm:$0xf] }
   0xe   :  { %v24_v2 = vld [vmem:[#allocation2 + $0x8] sm:$0xf]  ;;  %v23_v3 = vmax.f32 %v21_v0, %v22_v1  ;;  %v26_v4 = vld [vmem:[#allocation2 + $0xc] sm:$0xf]  ;;  %s91_s11 = smov [#allocation5]  }
   0xf   :  { %s35_s12 = sshll.u32 %s91_s11, 4  ;;  %s36_s12 = int_to_ptr.vmem [resolvable:$true] %s35_s12 }
  0x10   :  { %v25_v5 = vmax.f32 %v23_v3, %v24_v2  ;;  %s66_s13 = scalar_lea.vmem %s36_s12, 64  ;;  %p71_p6 = scmp.lt.s32.totalorder %s36_s12, %s36_s12 }
  0x11   :  { %p67_p5 = scmp.ne.s32.totalorder %s36_s12, %s66_s13  ;;  %p72_p7 = scmp.lt.s32.totalorder %s66_s13, %s66_s13 }
  0x12   :  { %v27_v6 = vmax.f32 %v25_v5, %v26_v4 }
  0x13   :  { %p73_p8 = por %p72_p7, %p71_p6 }
  0x14   :  { %28 = vst [vmem:[#allocation5] sm:$0xf] %v27_v6 }
  0x15   :  { %p74_p9 = pnand %p73_p8, %p67_p5 }
  0x17   :  { %77 = shalt.err (!%p74_p9)
}
  0x18   :  { %38 = dma.vmem_to_hbm [thread:$0]  %s36_s12, 64, %s109_s1, [#allocation4]  }
  0x19   :  { %88 = dma.done.wait [#allocation4], 64  }
  0x1a   :  { %89 = vsyncadd [#allocation4], 4294967232 }
  0x1b   :  { %42 = vsyncpa [#allocation3], 1 }
  0x1c   :  { %43 = vsyncpa [#allocation4], 1 }

</bundles_post_ra>
